<compile_context>
chip_gen: v7x
topology: tpu7x:2x2x1
jax: 0.10.0
libtpu: 0.0.40
codegen_flags: <defaults>
</compile_context>

<pallas_src>
import functools

import jax
import jax.numpy as jnp
from jax.experimental import pallas as pl
from jax.experimental.pallas import tpu as pltpu


def linear_kernel(x_ref, w_ref, b_ref, o_ref):
    # x_ref: (TB, D), w_ref: (D, O), b_ref: (1, O), o_ref: (TB, O)
    x = x_ref[...].astype(jnp.float32)
    w = w_ref[...].astype(jnp.float32)
    tb = x_ref.shape[0]
    d = x_ref.shape[1]
    o = w_ref.shape[1]
    # Bias broadcast over the batch tile; accumulate in f32 on the VPU.
    acc = jnp.zeros((tb, o), jnp.float32) + b_ref[...].astype(jnp.float32)
    # D == 8 (static) -> fully unrolled VPU broadcast-FMAs, MXU stays idle.
    for k in range(d):
        acc = acc + x[:, k:k + 1] * w[k:k + 1, :]
    o_ref[...] = acc.astype(o_ref.dtype)


@functools.partial(jax.jit, static_argnames=("block_b",))
def classification_model_forward(x, weight, bias, *, block_b=1024):
    """logits = x @ weight.T + bias  (PyTorch nn.Linear(input_dim, num_classes))."""
    B, D = x.shape
    O, Dw = weight.shape
    assert D == Dw and bias.shape == (O,)

    w = weight.T            # (D, O): kernel computes x @ w
    b2 = bias.reshape(1, O)

    # Batch tile: multiple of 8 (sublane size), capped to keep VMEM per step small.
    if B >= block_b:
        tb = block_b
    else:
        tb = max(8, ((B + 7) // 8) * 8)
    Bp = pl.cdiv(B, tb) * tb
    if Bp != B:
        x = jnp.pad(x, ((0, Bp - B), (0, 0)))

    out = pl.pallas_call(
        linear_kernel,
        out_shape=jax.ShapeDtypeStruct((Bp, O), x.dtype),
        grid=(Bp // tb,),
        in_specs=[
            pl.BlockSpec((tb, D), lambda i: (i, 0)),   # x: iterate over batch tiles
            pl.BlockSpec((D, O), lambda i: (0, 0)),    # weight: resident block
            pl.BlockSpec((1, O), lambda i: (0, 0)),    # bias: resident block
        ],
        out_specs=pl.BlockSpec((tb, O), lambda i: (i, 0)),
        compiler_params=pltpu.CompilerParams(
            dimension_semantics=("parallel",),          # megacore split on v7x
        ),
    )(x, w, b2)
    return out[:B]


if __name__ == "__main__":
    input_dim = 8
    num_classes = 5
    batch = 8

    key = jax.random.PRNGKey(0)
    kx, kw, kb = jax.random.split(key, 3)

    # nn.Linear-style init: U(-1/sqrt(fan_in), 1/sqrt(fan_in)); weight is (out, in).
    bound = 1.0 / float(input_dim) ** 0.5
    weight = jax.random.uniform(kw, (num_classes, input_dim), jnp.float32, -bound, bound)
    bias = jax.random.uniform(kb, (num_classes,), jnp.float32, -bound, bound)

    x = jax.random.normal(kx, (batch, input_dim), jnp.float32)

    y = classification_model_forward(x, weight, bias)
    y = jax.block_until_ready(y)

    y_ref = x @ weight.T + bias[None, :]
    assert y.shape == (batch, num_classes)
    assert jnp.allclose(y, y_ref, atol=1e-5), "mismatch vs reference (small batch)"

    # Also exercise the tiled + padded path (grid > 1, batch not a tile multiple).
    x_big = jax.random.normal(kx, (1000, input_dim), jnp.float32)
    y_big = jax.block_until_ready(
        classification_model_forward(x_big, weight, bias, block_b=512))
    y_big_ref = x_big @ weight.T + bias[None, :]
    assert y_big.shape == (1000, num_classes)
    assert jnp.allclose(y_big, y_big_ref, atol=1e-4), "mismatch vs reference (tiled batch)"

    print("KERNEL_OK")
</pallas_src>

<mosaic_0001>
module attributes {stable_mosaic.version = 11 : i64} {
  func.func @linear_kernel(%arg0: i32, %arg1: memref<8x8xf32, #tpu.memory_space<vmem>>, %arg2: memref<8x5xf32, #tpu.memory_space<vmem>>, %arg3: memref<1x5xf32, #tpu.memory_space<vmem>>, %arg4: memref<8x5xf32, #tpu.memory_space<vmem>>) attributes {dimension_semantics = [#tpu.dimension_semantics<parallel>], iteration_bounds = array<i64: 1>, scalar_prefetch = 0 : i64, scratch_operands = 0 : i64, tpu.core_type = #tpu.core_type<tc>, window_params = [{transform_indices = @transform_0, window_bounds = array<i64: 8, 8>}, {pipeline_mode = #tpu.pipeline_mode<synchronous>, transform_indices = @transform_1, window_bounds = array<i64: 8, 5>}, {pipeline_mode = #tpu.pipeline_mode<synchronous>, transform_indices = @transform_2, window_bounds = array<i64: 1, 5>}, {transform_indices = @transform_3, window_bounds = array<i64: 8, 5>}]} {
    %c0 = arith.constant 0 : index
    %c0_0 = arith.constant 0 : index
    %0 = vector.load %arg1[%c0, %c0_0] : memref<8x8xf32, #tpu.memory_space<vmem>>, vector<8x8xf32>
    %c0_1 = arith.constant 0 : index
    %c0_2 = arith.constant 0 : index
    %1 = vector.load %arg2[%c0_1, %c0_2] : memref<8x5xf32, #tpu.memory_space<vmem>>, vector<8x5xf32>
    %cst = arith.constant 0.000000e+00 : f32
    %2 = vector.broadcast %cst : f32 to vector<8x5xf32>
    %c0_3 = arith.constant 0 : index
    %c0_4 = arith.constant 0 : index
    %3 = vector.load %arg3[%c0_3, %c0_4] : memref<1x5xf32, #tpu.memory_space<vmem>>, vector<1x5xf32>
    %4 = vector.broadcast %3 : vector<1x5xf32> to vector<8x5xf32>
    %5 = arith.addf %2, %4 : vector<8x5xf32>
    %6 = vector.extract_strided_slice %0 {offsets = [0, 0], sizes = [8, 1], strides = [1, 1]} : vector<8x8xf32> to vector<8x1xf32>
    %7 = vector.extract_strided_slice %1 {offsets = [0, 0], sizes = [1, 5], strides = [1, 1]} : vector<8x5xf32> to vector<1x5xf32>
    %8 = vector.broadcast %6 : vector<8x1xf32> to vector<8x5xf32>
    %9 = vector.broadcast %7 : vector<1x5xf32> to vector<8x5xf32>
    %10 = arith.mulf %8, %9 : vector<8x5xf32>
    %11 = arith.addf %5, %10 : vector<8x5xf32>
    %12 = vector.extract_strided_slice %0 {offsets = [0, 1], sizes = [8, 1], strides = [1, 1]} : vector<8x8xf32> to vector<8x1xf32>
    %13 = vector.extract_strided_slice %1 {offsets = [1, 0], sizes = [1, 5], strides = [1, 1]} : vector<8x5xf32> to vector<1x5xf32>
    %14 = vector.broadcast %12 : vector<8x1xf32> to vector<8x5xf32>
    %15 = vector.broadcast %13 : vector<1x5xf32> to vector<8x5xf32>
    %16 = arith.mulf %14, %15 : vector<8x5xf32>
    %17 = arith.addf %11, %16 : vector<8x5xf32>
    %18 = vector.extract_strided_slice %0 {offsets = [0, 2], sizes = [8, 1], strides = [1, 1]} : vector<8x8xf32> to vector<8x1xf32>
    %19 = vector.extract_strided_slice %1 {offsets = [2, 0], sizes = [1, 5], strides = [1, 1]} : vector<8x5xf32> to vector<1x5xf32>
    %20 = vector.broadcast %18 : vector<8x1xf32> to vector<8x5xf32>
    %21 = vector.broadcast %19 : vector<1x5xf32> to vector<8x5xf32>
    %22 = arith.mulf %20, %21 : vector<8x5xf32>
    %23 = arith.addf %17, %22 : vector<8x5xf32>
    %24 = vector.extract_strided_slice %0 {offsets = [0, 3], sizes = [8, 1], strides = [1, 1]} : vector<8x8xf32> to vector<8x1xf32>
    %25 = vector.extract_strided_slice %1 {offsets = [3, 0], sizes = [1, 5], strides = [1, 1]} : vector<8x5xf32> to vector<1x5xf32>
    %26 = vector.broadcast %24 : vector<8x1xf32> to vector<8x5xf32>
    %27 = vector.broadcast %25 : vector<1x5xf32> to vector<8x5xf32>
    %28 = arith.mulf %26, %27 : vector<8x5xf32>
    %29 = arith.addf %23, %28 : vector<8x5xf32>
    %30 = vector.extract_strided_slice %0 {offsets = [0, 4], sizes = [8, 1], strides = [1, 1]} : vector<8x8xf32> to vector<8x1xf32>
    %31 = vector.extract_strided_slice %1 {offsets = [4, 0], sizes = [1, 5], strides = [1, 1]} : vector<8x5xf32> to vector<1x5xf32>
    %32 = vector.broadcast %30 : vector<8x1xf32> to vector<8x5xf32>
    %33 = vector.broadcast %31 : vector<1x5xf32> to vector<8x5xf32>
    %34 = arith.mulf %32, %33 : vector<8x5xf32>
    %35 = arith.addf %29, %34 : vector<8x5xf32>
    %36 = vector.extract_strided_slice %0 {offsets = [0, 5], sizes = [8, 1], strides = [1, 1]} : vector<8x8xf32> to vector<8x1xf32>
    %37 = vector.extract_strided_slice %1 {offsets = [5, 0], sizes = [1, 5], strides = [1, 1]} : vector<8x5xf32> to vector<1x5xf32>
    %38 = vector.broadcast %36 : vector<8x1xf32> to vector<8x5xf32>
    %39 = vector.broadcast %37 : vector<1x5xf32> to vector<8x5xf32>
    %40 = arith.mulf %38, %39 : vector<8x5xf32>
    %41 = arith.addf %35, %40 : vector<8x5xf32>
    %42 = vector.extract_strided_slice %0 {offsets = [0, 6], sizes = [8, 1], strides = [1, 1]} : vector<8x8xf32> to vector<8x1xf32>
    %43 = vector.extract_strided_slice %1 {offsets = [6, 0], sizes = [1, 5], strides = [1, 1]} : vector<8x5xf32> to vector<1x5xf32>
    %44 = vector.broadcast %42 : vector<8x1xf32> to vector<8x5xf32>
    %45 = vector.broadcast %43 : vector<1x5xf32> to vector<8x5xf32>
    %46 = arith.mulf %44, %45 : vector<8x5xf32>
    %47 = arith.addf %41, %46 : vector<8x5xf32>
    %48 = vector.extract_strided_slice %0 {offsets = [0, 7], sizes = [8, 1], strides = [1, 1]} : vector<8x8xf32> to vector<8x1xf32>
    %49 = vector.extract_strided_slice %1 {offsets = [7, 0], sizes = [1, 5], strides = [1, 1]} : vector<8x5xf32> to vector<1x5xf32>
    %50 = vector.broadcast %48 : vector<8x1xf32> to vector<8x5xf32>
    %51 = vector.broadcast %49 : vector<1x5xf32> to vector<8x5xf32>
    %52 = arith.mulf %50, %51 : vector<8x5xf32>
    %53 = arith.addf %47, %52 : vector<8x5xf32>
    %c0_5 = arith.constant 0 : index
    %c0_6 = arith.constant 0 : index
    %54 = vector.load %arg4[%c0_5, %c0_6] : memref<8x5xf32, #tpu.memory_space<vmem>>, vector<8x5xf32>
    tpu.vector_store %arg4[%c0_5, %c0_6], %53 {strides = array<i32>} : memref<8x5xf32, #tpu.memory_space<vmem>>, vector<8x5xf32>,
    return
  }
  func.func @transform_0(%arg0: i32) -> (i32, i32) {
    %c0_i32 = arith.constant 0 : i32
    %c0_i32_0 = arith.constant 0 : i32
    return %arg0, %c0_i32 : i32, i32
  }
  func.func @transform_1(%arg0: i32) -> (i32, i32) {
    %c0_i32 = arith.constant 0 : i32
    %c0_i32_0 = arith.constant 0 : i32
    %c0_i32_1 = arith.constant 0 : i32
    return %c0_i32, %c0_i32_0 : i32, i32
  }
  func.func @transform_2(%arg0: i32) -> (i32, i32) {
    %c0_i32 = arith.constant 0 : i32
    %c0_i32_0 = arith.constant 0 : i32
    %c0_i32_1 = arith.constant 0 : i32
    return %c0_i32, %c0_i32_0 : i32, i32
  }
  func.func @transform_3(%arg0: i32) -> (i32, i32) {
    %c0_i32 = arith.constant 0 : i32
    %c0_i32_0 = arith.constant 0 : i32
    return %arg0, %c0_i32 : i32, i32
  }
}

</mosaic_0001>

<bundles_post_ra>
// kernel: classification_model_forward.1
= control target key start
LH: loop header
LB: loop body
LE: loop exit
PB: predicated region body
PF: predicated region fallthrough
CT: control target
= control target key end

     0   :  { %v165_v1 = vmov 2   ;;  %v166_v2 = vmov 0   ;;  %s215_s0 = inlined_call_operand.vmem [shape: f32[8,8], index: 0, kind: input, shape index: {}]   ;;  %s216_s1 = inlined_call_operand.vmem [shape: f32[8,5], index: 1, kind: input, shape index: {}]   ;;  %s217_s2 = inlined_call_operand.vmem [shape: f32[1,5], index: 2, kind: input, shape index: {}]   ;;  %s218_s3 = inlined_call_operand.hbm [shape: f32[8,5], index: 3, kind: output, shape index: {}]  }
   0x1   :  { %v15_v0 = vld [vmem:[%s215_s0] sm:$0xff]  ;;  %134 = vset.pattern.permute.xlu1 %v165_v1  ;;  %132 = vset.pattern.permute.xlu0 %v166_v2 }
   0x2   :  { %8 = vsyncpa [#allocation3], 0  ;;  %47 = vperm.xlu1 %134, %v15_v0   ;;  %27 = vperm.xlu0 %132, %v15_v0   ;;  %v167_v3 = vmov 3   ;;  %v168_v4 = vmov 1   ;;  %v169_v5 = vmov 4   ;;  %v170_v6 = vmov 5  }
   0x3   :  { %v171_v7 = vmov 6   ;;  %v172_v8 = vmov 7   ;;  %v30_v9 = vlaneseq  ;;  %v16_v12 = vld [vmem:[%s216_s1] sm:$0xff]  ;;  %s173_s1 = smov [#allocation2]   ;;  %vm106_vm0 = vcmask 39936  }
   0x4   :  { %v122_v18 = vld [vmem:[%s217_s2] ss:$0 sm:$0xff]  ;;  %s114_s2 = sshll.u32 %s173_s1, 4  ;;  %s115_s2 = int_to_ptr.vmem [resolvable:$true] %s114_s2 }
   0x5   :  { %v31_v10 = vshrl.u32 %v30_v9, 7  ;;  %s141_s17 = scalar_lea.vmem %s115_s2, 128  ;;  %p146_p1 = scmp.lt.s32.totalorder %s115_s2, %s115_s2 }
   0x6   :  { %135 = vset.pattern.permute.xlu1 %v167_v3  ;;  %133 = vset.pattern.permute.xlu0 %v168_v4  ;;  %p142_p0 = scmp.ne.s32.totalorder %s115_s2, %s141_s17  ;;  %p147_p2 = scmp.lt.s32.totalorder %s141_s17, %s141_s17 }
   0x7   :  { %57 = vperm.xlu1 %135, %v15_v0   ;;  %37 = vperm.xlu0 %133, %v15_v0   ;;  %v32_v11 = vsub.s32 0, %v31_v10  ;;  %v42_v14 = vsub.s32 1, %v31_v10  ;;  %v52_v15 = vsub.s32 2, %v31_v10  ;;  %v62_v20 = vsub.s32 3, %v31_v10 }
   0x8   :  { %v72_v22 = vsub.s32 4, %v31_v10  ;;  %v82_v27 = vsub.s32 5, %v31_v10  ;;  %v92_v34 = vsub.s32 6, %v31_v10  ;;  %v102_v43 = vsub.s32 7, %v31_v10  ;;  %p148_p3 = por %p147_p2, %p146_p1 }
   0x9   :  { %v33_v13 = vrot.slane %v16_v12, %v32_v11  ;;  %v43_v21 = vrot.slane %v16_v12, %v42_v14  ;;  %v53_v23 = vrot.slane %v16_v12, %v52_v15  ;;  %v63_v28 = vrot.slane %v16_v12, %v62_v20 }
   0xa   :  { %v73_v30 = vrot.slane %v16_v12, %v72_v22  ;;  %v83_v33 = vrot.slane %v16_v12, %v82_v27  ;;  %v93_v42 = vrot.slane %v16_v12, %v92_v34  ;;  %v103_v48 = vrot.slane %v16_v12, %v102_v43  ;;  %p149_p4 = pnand %p148_p3, %p142_p0 }
   0xb   :  { %136 = vset.pattern.permute.xlu1 %v169_v5  ;;  %137 = vset.pattern.permute.xlu0 %v170_v6 }
   0xc   :  { %67 = vperm.xlu1 %136, %v15_v0   ;;  %77 = vperm.xlu0 %137, %v15_v0  }
  0x10   :  { %138 = vset.pattern.permute.xlu1 %v171_v7  ;;  %140 = vset.pattern.permute.xlu0 %v172_v8 }
  0x11   :  { %87 = vperm.xlu1 %138, %v15_v0  }
  0x15   :  { %139 = vset.pattern.permute.xlu1 %v172_v8 }
  0x16   :  { %97 = vperm.xlu1 %139, %v15_v0  }
  0x81   :  { %v48_v16 = vpop.permute.xlu1 %47  ;;  %v28_v17 = vpop.permute.xlu0 %27 }
  0x82   :  { %v34_v19 = vmul.f32 %v33_v13, %v28_v17  ;;  %v54_v31 = vmul.f32 %v53_v23, %v48_v16 }
  0x84   :  { %v35_v24 = vadd.f32 %v122_v18, %v34_v19 }
  0x86   :  { %v58_v25 = vpop.permute.xlu1 %57  ;;  %v38_v26 = vpop.permute.xlu0 %37 }
  0x87   :  { %v44_v29 = vmul.f32 %v43_v21, %v38_v26  ;;  %v64_v35 = vmul.f32 %v63_v28, %v58_v25 }
  0x89   :  { %v45_v32 = vadd.f32 %v44_v29, %v35_v24 }
  0x8b   :  { %v55_v36 = vadd.f32 %v54_v31, %v45_v32  ;;  %v68_v37 = vpop.permute.xlu1 %67  ;;  %v78_v38 = vpop.permute.xlu0 %77 }
  0x8c   :  { %v74_v39 = vmul.f32 %v73_v30, %v68_v37  ;;  %v84_v41 = vmul.f32 %v83_v33, %v78_v38 }
  0x8d   :  { %v65_v40 = vadd.f32 %v64_v35, %v55_v36 }
  0x8f   :  { %v75_v44 = vadd.f32 %v74_v39, %v65_v40 }
  0x90   :  { %v88_v45 = vpop.permute.xlu1 %87 }
  0x91   :  { %v85_v46 = vadd.f32 %v84_v41, %v75_v44  ;;  %v94_v47 = vmul.f32 %v93_v42, %v88_v45 }
  0x93   :  { %v95_v50 = vadd.f32 %v94_v47, %v85_v46 }
  0x95   :  { %v98_v49 = vpop.permute.xlu1 %97 }
  0x96   :  { %v104_v51 = vmul.f32 %v103_v48, %v98_v49 }
  0x98   :  { %v105_v52 = vadd.f32 %v104_v51, %v95_v50 }
  0x9a   :  { %107 = vst.msk [vmem:[#allocation2] sm:$0xff] %vm106_vm0, %v105_v52 }
  0x9b   :  { %152 = shalt.err (!%p149_p4)
}
  0x9c   :  { %s153_s20 = scalar_lea.hbm %s218_s3, 128 }
  0x9d   :  { %p154_p5 = scmp.ne.s32.totalorder %s218_s3, %s153_s20  ;;  %p157_p6 = scmp.lt.u32.totalorder %s153_s20, %s218_s3 }
  0x9f   :  { %p159_p7 = pnand %p157_p6, %p154_p5 }
  0xa1   :  { %162 = shalt.err (!%p159_p7)
}
  0xa2   :  { %117 = dma.vmem_to_hbm [thread:$0]  %s115_s2, 128, %s218_s3, [#allocation3]  }
  0xa3   :  { %163 = dma.done.wait [#allocation3], 128  }
  0xa4   :  { %164 = vsyncadd [#allocation3], 4294967168 }
  0xa5   :  { %121 = vsyncpa [#allocation3], 1 }

</bundles_post_ra>
